<compile_context>
chip_gen: v7x
topology: tpu7x:2x2x1
jax: 0.10.0
libtpu: 0.0.40
codegen_flags: <defaults>
</compile_context>

<pallas_src>
import functools
import math

import jax
import jax.numpy as jnp
from jax.experimental import pallas as pl
from jax.experimental.pallas import tpu as pltpu


def _decoder_kernel(L, H, tok_ref, h_in_ref, c_in_ref, emb_ref, *rest):
    """One teacher-forced decode step per grid iteration (state carried in the
    VMEM-resident output refs).

    rest = (w_cat_0..w_cat_{L-1}, bias_0..bias_{L-1}, fc_w, fc_b,
            pred_out, h_out, c_out)
    w_cat_l : [in_l + H, 4H] bf16  (in_0 = E, in_{l>0} = H), gates i|f|g|o lanes
    bias_l  : [1, 4H] f32          (= b_ih + b_hh, concatenated per gate)
    fc_w    : [H, Vpad] bf16,  fc_b : [1, Vpad] f32
    """
    w_refs = rest[0:L]
    b_refs = rest[L:2 * L]
    fc_w_ref = rest[2 * L]
    fc_b_ref = rest[2 * L + 1]
    pred_ref = rest[2 * L + 2]
    h_ref = rest[2 * L + 3]      # carried hidden state (VMEM-resident)
    c_ref = rest[2 * L + 4]      # carried cell   state (VMEM-resident)

    B = tok_ref.shape[1]
    V = emb_ref.shape[0]
    t = pl.program_id(0)

    # Load initial state once; afterwards h_ref/c_ref carry it across steps.
    @pl.when(t == 0)
    def _():
        h_ref[...] = h_in_ref[...]
        c_ref[...] = c_in_ref[...]

    # Fused embedding lookup: one-hot @ table on the MXU (V is small here).
    tok = tok_ref[0]                                              # [B, 1] i32
    onehot = (jax.lax.broadcasted_iota(jnp.int32, (B, V), 1) == tok
              ).astype(jnp.bfloat16)                              # bool -> bf16
    x = jnp.dot(onehot, emb_ref[...],
                preferred_element_type=jnp.float32)               # [B, E] f32
    # dropout = identity in eval mode.

    # Hoisted activation constants: sigmoid(x) = 0.5*tanh(x/2)+0.5 on the
    # i/f/o lanes, plain tanh on the g-gate lanes -> one EUP pass per layer.
    lane = jax.lax.broadcasted_iota(jnp.int32, (B, 4 * H), 1)
    is_g = jnp.logical_and(lane >= 2 * H, lane < 3 * H)
    g_mul = jnp.where(is_g, 1.0, 0.5).astype(jnp.float32)
    g_add = jnp.where(is_g, 0.0, 0.5).astype(jnp.float32)

    layer_in = x
    for l in range(L):
        h_prev = h_ref[l]                                         # [B, H] f32
        c_prev = c_ref[l]                                         # [B, H] f32

        # Single fused gate matmul per layer (bf16 operands, f32 accumulation).
        xh = jnp.concatenate([layer_in, h_prev], axis=1).astype(jnp.bfloat16)
        gates = (jnp.dot(xh, w_refs[l][...],
                         preferred_element_type=jnp.float32)
                 + b_refs[l][...])                                # [B, 4H] f32

        act = jnp.tanh(gates * g_mul) * g_mul + g_add             # one tanh pass

        i_g = act[:, 0:H]
        f_g = act[:, H:2 * H]
        g_g = act[:, 2 * H:3 * H]
        o_g = act[:, 3 * H:4 * H]

        c_new = f_g * c_prev + i_g * g_g                          # f32 VPU
        h_new = o_g * jnp.tanh(c_new)

        h_ref[l] = h_new
        c_ref[l] = c_new
        layer_in = h_new                                          # next layer

    # prediction = fc_out(output.squeeze(0))   (lane-dense Vpad columns)
    pred_ref[0] = (jnp.dot(layer_in.astype(jnp.bfloat16), fc_w_ref[...],
                           preferred_element_type=jnp.float32)
                   + fc_b_ref[...])


def decoder_decode(tokens, hidden, cell, params,
                   *, vmem_limit_bytes=32 * 1024 * 1024):
    """Run T teacher-forced decode steps; weights stay VMEM-resident across T.

    tokens: [T, B] int32, hidden/cell: [L, B, H] f32.
    Returns (predictions [T, B, V], hidden, cell).
    """
    T, B = tokens.shape
    L, _, H = hidden.shape
    V_emb, E = params["embedding"].shape
    V = params["fc_w"].shape[1]

    # Lane-dense output: pad V up to a multiple of 128, slice back afterwards.
    V_pad = max(128, ((V + 127) // 128) * 128)
    fc_w = params["fc_w"]
    fc_b = params["fc_b"]
    if V_pad != V:
        fc_w = jnp.pad(fc_w, ((0, 0), (0, V_pad - V)))
        fc_b = jnp.pad(fc_b, ((0, 0), (0, V_pad - V)))

    tok3d = tokens.astype(jnp.int32).reshape(T, B, 1)

    w_cat = list(params["w_cat"])
    bias = list(params["bias"])
    inputs = [tok3d, hidden, cell, params["embedding"]] + w_cat + bias + [fc_w, fc_b]

    # Constant block index => fetched once, VMEM-resident for all T steps.
    def const(shape):
        return pl.BlockSpec(shape, lambda t: (0,) * len(shape))

    in_specs = [
        pl.BlockSpec((1, B, 1), lambda t: (t, 0, 0)),   # tokens: per-step block
        const((L, B, H)),                               # hidden (read at t == 0)
        const((L, B, H)),                               # cell   (read at t == 0)
        const((V_emb, E)),                              # embedding table
    ]
    in_specs += [const(w.shape) for w in w_cat]
    in_specs += [const(b.shape) for b in bias]
    in_specs += [const((H, V_pad)), const((1, V_pad))]

    out_shape = (
        jax.ShapeDtypeStruct((T, B, V_pad), jnp.float32),  # predictions (padded)
        jax.ShapeDtypeStruct((L, B, H), jnp.float32),      # new hidden
        jax.ShapeDtypeStruct((L, B, H), jnp.float32),      # new cell
    )
    out_specs = (
        pl.BlockSpec((1, B, V_pad), lambda t: (t, 0, 0)),
        pl.BlockSpec((L, B, H), lambda t: (0, 0, 0)),      # state carried in VMEM
        pl.BlockSpec((L, B, H), lambda t: (0, 0, 0)),
    )

    # Advisory cost estimate for the XLA scheduler.
    flops_step = 2 * B * V_emb * E + 2 * B * H * V_pad
    for l in range(L):
        in_l = E if l == 0 else H
        flops_step += 2 * B * (in_l + H) * 4 * H
    transcendentals = T * L * B * 5 * H                   # one tanh pass + tanh(c)
    in_bytes = sum(int(a.size) * a.dtype.itemsize for a in inputs)
    out_bytes = T * B * V_pad * 4 + 2 * L * B * H * 4
    cost = pl.CostEstimate(flops=T * flops_step,
                           transcendentals=transcendentals,
                           bytes_accessed=in_bytes + out_bytes)

    pred_full, h_new, c_new = pl.pallas_call(
        functools.partial(_decoder_kernel, L, H),
        grid=(T,),
        in_specs=in_specs,
        out_specs=out_specs,
        out_shape=out_shape,
        # tok=0, hidden=1, cell=2  ->  outputs pred=0, hidden=1, cell=2
        input_output_aliases={1: 1, 2: 2},
        compiler_params=pltpu.CompilerParams(
            dimension_semantics=("arbitrary",),           # sequential state carry
            vmem_limit_bytes=vmem_limit_bytes),
        cost_estimate=cost,
    )(*inputs)
    return pred_full[:, :, :V], h_new, c_new


def decoder_step(tokens, hidden, cell, params):
    """Pallas-backed equivalent of Decoder.forward (single step, eval mode)."""
    pred, h_new, c_new = decoder_decode(tokens[None, :], hidden, cell, params)
    return pred[0], h_new, c_new


def init_params(key, output_dim, emb_dim, hid_dim, n_layers):
    """Deterministic init. Gate weights stored pre-fused as lane-dense
    [(in_l+H), 4H] slabs ([W_ih; W_hh] stacked on rows, gate order i|f|g|o on
    lanes) in bf16; folded biases (b_ih + b_hh) and fc bias in f32.
    Init-only deviation from PyTorch: the fused slab / folded bias are drawn
    from a single uniform instead of separate per-matrix draws.
    """
    k = 1.0 / math.sqrt(hid_dim)
    keys = jax.random.split(key, 2 + n_layers)
    params = {}
    params["embedding"] = jax.random.normal(
        keys[0], (output_dim, emb_dim), dtype=jnp.float32).astype(jnp.bfloat16)

    w_cat, bias = [], []
    for l in range(n_layers):
        in_dim = emb_dim if l == 0 else hid_dim
        kl = jax.random.split(keys[2 + l], 2)
        w_cat.append(jax.random.uniform(
            kl[0], (in_dim + hid_dim, 4 * hid_dim), minval=-k, maxval=k,
            dtype=jnp.float32).astype(jnp.bfloat16))
        bias.append(jax.random.uniform(
            kl[1], (1, 4 * hid_dim), minval=-2 * k, maxval=2 * k,
            dtype=jnp.float32))
    params["w_cat"], params["bias"] = w_cat, bias

    kf = jax.random.split(keys[1], 2)
    params["fc_w"] = jax.random.uniform(
        kf[0], (hid_dim, output_dim), minval=-k, maxval=k,
        dtype=jnp.float32).astype(jnp.bfloat16)
    params["fc_b"] = jax.random.uniform(
        kf[1], (1, output_dim), minval=-k, maxval=k, dtype=jnp.float32)
    return params


def decoder_step_reference(tokens, hidden, cell, params):
    """Pure-JAX single-step reference (mirrors the kernel's bf16-rounded
    matmul operands)."""
    L, B, H = hidden.shape
    emb = params["embedding"].astype(jnp.float32)
    layer_in = jnp.take(emb, tokens, axis=0)
    h_list, c_list = [], []
    for l in range(L):
        w = params["w_cat"][l].astype(jnp.float32)
        b = params["bias"][l]
        xh = jnp.concatenate([layer_in, hidden[l]], axis=1)
        xh = xh.astype(jnp.bfloat16).astype(jnp.float32)
        gates = xh @ w + b
        i_g = jax.nn.sigmoid(gates[:, 0:H])
        f_g = jax.nn.sigmoid(gates[:, H:2 * H])
        g_g = jnp.tanh(gates[:, 2 * H:3 * H])
        o_g = jax.nn.sigmoid(gates[:, 3 * H:4 * H])
        c_new = f_g * cell[l] + i_g * g_g
        h_new = o_g * jnp.tanh(c_new)
        h_list.append(h_new)
        c_list.append(c_new)
        layer_in = h_new
    fin = layer_in.astype(jnp.bfloat16).astype(jnp.float32)
    pred = fin @ params["fc_w"].astype(jnp.float32) + params["fc_b"]
    return pred, jnp.stack(h_list), jnp.stack(c_list)


def decoder_decode_reference(tokens, hidden, cell, params):
    preds = []
    for t in range(tokens.shape[0]):
        p, hidden, cell = decoder_step_reference(tokens[t], hidden, cell, params)
        preds.append(p)
    return jnp.stack(preds), hidden, cell


if __name__ == "__main__":
    # Small shapes consistent with the module's forward.
    OUTPUT_DIM, EMB_DIM, HID_DIM, N_LAYERS, BATCH, T = 64, 32, 32, 2, 2, 4

    key = jax.random.PRNGKey(0)
    kp, kt, kh, kc = jax.random.split(key, 4)
    params = init_params(kp, OUTPUT_DIM, EMB_DIM, HID_DIM, N_LAYERS)

    tokens_seq = jax.random.randint(kt, (T, BATCH), 0, OUTPUT_DIM, dtype=jnp.int32)
    hidden = jax.random.normal(kh, (N_LAYERS, BATCH, HID_DIM), dtype=jnp.float32)
    cell = jax.random.normal(kc, (N_LAYERS, BATCH, HID_DIM), dtype=jnp.float32)

    # --- Single-step forward: exact Decoder.forward semantics -------------
    pred, h1, c1 = decoder_step(tokens_seq[0], hidden, cell, params)
    jax.block_until_ready((pred, h1, c1))

    pred_r, h_r, c_r = decoder_step_reference(tokens_seq[0], hidden, cell, params)
    assert pred.shape == (BATCH, OUTPUT_DIM)
    assert h1.shape == (N_LAYERS, BATCH, HID_DIM)
    assert c1.shape == (N_LAYERS, BATCH, HID_DIM)
    assert jnp.allclose(pred, pred_r, atol=2e-3, rtol=2e-3)
    assert jnp.allclose(h1, h_r, atol=2e-3, rtol=2e-3)
    assert jnp.allclose(c1, c_r, atol=2e-3, rtol=2e-3)

    # --- Multi-step decode: T grid axis, weights resident across steps ----
    preds, hT, cT = decoder_decode(tokens_seq, hidden, cell, params)
    jax.block_until_ready((preds, hT, cT))

    preds_r, hT_r, cT_r = decoder_decode_reference(tokens_seq, hidden, cell, params)
    assert preds.shape == (T, BATCH, OUTPUT_DIM)
    assert jnp.allclose(preds, preds_r, atol=1e-2, rtol=1e-2)
    assert jnp.allclose(hT, hT_r, atol=1e-2, rtol=1e-2)
    assert jnp.allclose(cT, cT_r, atol=1e-2, rtol=1e-2)

    print("KERNEL_OK")
</pallas_src>

<mosaic_0001>
module attributes {stable_mosaic.version = 11 : i64} {
  func.func @_decoder_kernel(%arg0: i32, %arg1: memref<1x2x1xi32, #tpu.memory_space<vmem>>, %arg2: memref<2x2x32xf32, #tpu.memory_space<vmem>>, %arg3: memref<2x2x32xf32, #tpu.memory_space<vmem>>, %arg4: memref<64x32xbf16, #tpu.memory_space<vmem>>, %arg5: memref<64x128xbf16, #tpu.memory_space<vmem>>, %arg6: memref<64x128xbf16, #tpu.memory_space<vmem>>, %arg7: memref<1x128xf32, #tpu.memory_space<vmem>>, %arg8: memref<1x128xf32, #tpu.memory_space<vmem>>, %arg9: memref<32x128xbf16, #tpu.memory_space<vmem>>, %arg10: memref<1x128xf32, #tpu.memory_space<vmem>>, %arg11: memref<1x2x128xf32, #tpu.memory_space<vmem>>, %arg12: memref<2x2x32xf32, #tpu.memory_space<vmem>>, %arg13: memref<2x2x32xf32, #tpu.memory_space<vmem>>) attributes {dimension_semantics = [#tpu.dimension_semantics<arbitrary>], iteration_bounds = array<i64: 1>, scalar_prefetch = 0 : i64, scratch_operands = 0 : i64, tpu.core_type = #tpu.core_type<tc>, window_params = [{transform_indices = @transform_0, window_bounds = array<i64: 1, 2, 1>}, {pipeline_mode = #tpu.pipeline_mode<synchronous>, transform_indices = @transform_1, window_bounds = array<i64: 2, 2, 32>}, {pipeline_mode = #tpu.pipeline_mode<synchronous>, transform_indices = @transform_2, window_bounds = array<i64: 2, 2, 32>}, {pipeline_mode = #tpu.pipeline_mode<synchronous>, transform_indices = @transform_3, window_bounds = array<i64: 64, 32>}, {pipeline_mode = #tpu.pipeline_mode<synchronous>, transform_indices = @transform_4, window_bounds = array<i64: 64, 128>}, {pipeline_mode = #tpu.pipeline_mode<synchronous>, transform_indices = @transform_5, window_bounds = array<i64: 64, 128>}, {pipeline_mode = #tpu.pipeline_mode<synchronous>, transform_indices = @transform_6, window_bounds = array<i64: 1, 128>}, {pipeline_mode = #tpu.pipeline_mode<synchronous>, transform_indices = @transform_7, window_bounds = array<i64: 1, 128>}, {pipeline_mode = #tpu.pipeline_mode<synchronous>, transform_indices = @transform_8, window_bounds = array<i64: 32, 128>}, {pipeline_mode = #tpu.pipeline_mode<synchronous>, transform_indices = @transform_9, window_bounds = array<i64: 1, 128>}, {transform_indices = @transform_10, window_bounds = array<i64: 1, 2, 128>}, {pipeline_mode = #tpu.pipeline_mode<synchronous>, transform_indices = @transform_11, window_bounds = array<i64: 2, 2, 32>}, {pipeline_mode = #tpu.pipeline_mode<synchronous>, transform_indices = @transform_12, window_bounds = array<i64: 2, 2, 32>}]} {
    %c0_i32 = arith.constant 0 : i32
    %0 = arith.cmpi eq, %arg0, %c0_i32 : i32
    %1 = arith.extui %0 : i1 to i32
    %c0_i32_0 = arith.constant 0 : i32
    %2 = arith.cmpi ne, %1, %c0_i32_0 : i32
    scf.if %2 {
      %c0_50 = arith.constant 0 : index
      %c0_51 = arith.constant 0 : index
      %c0_52 = arith.constant 0 : index
      %94 = vector.load %arg2[%c0_50, %c0_51, %c0_52] : memref<2x2x32xf32, #tpu.memory_space<vmem>>, vector<2x2x32xf32>
      %c0_53 = arith.constant 0 : index
      %c0_54 = arith.constant 0 : index
      %c0_55 = arith.constant 0 : index
      %95 = vector.load %arg12[%c0_53, %c0_54, %c0_55] : memref<2x2x32xf32, #tpu.memory_space<vmem>>, vector<2x2x32xf32>
      tpu.vector_store %arg12[%c0_53, %c0_54, %c0_55], %94 {strides = array<i32>} : memref<2x2x32xf32, #tpu.memory_space<vmem>>, vector<2x2x32xf32>,
      %c0_56 = arith.constant 0 : index
      %c0_57 = arith.constant 0 : index
      %c0_58 = arith.constant 0 : index
      %96 = vector.load %arg3[%c0_56, %c0_57, %c0_58] : memref<2x2x32xf32, #tpu.memory_space<vmem>>, vector<2x2x32xf32>
      %c0_59 = arith.constant 0 : index
      %c0_60 = arith.constant 0 : index
      %c0_61 = arith.constant 0 : index
      %97 = vector.load %arg13[%c0_59, %c0_60, %c0_61] : memref<2x2x32xf32, #tpu.memory_space<vmem>>, vector<2x2x32xf32>
      tpu.vector_store %arg13[%c0_59, %c0_60, %c0_61], %96 {strides = array<i32>} : memref<2x2x32xf32, #tpu.memory_space<vmem>>, vector<2x2x32xf32>,
    } else {
    }
    %c0 = arith.constant 0 : index
    %c0_1 = arith.constant 0 : index
    %c0_2 = arith.constant 0 : index
    %3 = vector.load %arg1[%c0, %c0_1, %c0_2] : memref<1x2x1xi32, #tpu.memory_space<vmem>>, vector<1x2x1xi32>
    %4 = vector.shape_cast %3 : vector<1x2x1xi32> to vector<2x1xi32>
    %5 = tpu.iota {dimensions = array<i32: 1>} : vector<2x64xi32>
    %6 = vector.broadcast %4 : vector<2x1xi32> to vector<2x64xi32>
    %7 = arith.cmpi eq, %5, %6 : vector<2x64xi32>
    %8 = arith.extui %7 : vector<2x64xi1> to vector<2x64xi32>
    %9 = arith.sitofp %8 : vector<2x64xi32> to vector<2x64xf32>
    %10 = arith.truncf %9 : vector<2x64xf32> to vector<2x64xbf16>
    %c0_3 = arith.constant 0 : index
    %c0_4 = arith.constant 0 : index
    %11 = vector.load %arg4[%c0_3, %c0_4] : memref<64x32xbf16, #tpu.memory_space<vmem>>, vector<64x32xbf16>
    %cst = arith.constant dense<0.000000e+00> : vector<2x32xf32>
    %12 = tpu.matmul %10, %11, %cst {dimension_numbers = #tpu.dot_dimension_numbers<[1], [0], [0], [1], [0, 0, 1, 1], [], []>} : vector<2x64xbf16>, vector<64x32xbf16>, vector<2x32xf32> -> vector<2x32xf32>
    %13 = tpu.iota {dimensions = array<i32: 1>} : vector<2x128xi32>
    %c64_i32 = arith.constant 64 : i32
    %14 = vector.broadcast %c64_i32 : i32 to vector<2x128xi32>
    %15 = arith.cmpi sge, %13, %14 : vector<2x128xi32>
    %c96_i32 = arith.constant 96 : i32
    %16 = vector.broadcast %c96_i32 : i32 to vector<2x128xi32>
    %17 = arith.cmpi slt, %13, %16 : vector<2x128xi32>
    %18 = arith.andi %15, %17 : vector<2x128xi1>
    %cst_5 = arith.constant 1.000000e+00 : f32
    %cst_6 = arith.constant 5.000000e-01 : f32
    %19 = vector.broadcast %cst_5 : f32 to vector<2x128xf32>
    %20 = vector.broadcast %cst_6 : f32 to vector<2x128xf32>
    %21 = arith.select %18, %19, %20 : vector<2x128xi1>, vector<2x128xf32>
    %cst_7 = arith.constant 0.000000e+00 : f32
    %cst_8 = arith.constant 5.000000e-01 : f32
    %22 = vector.broadcast %cst_7 : f32 to vector<2x128xf32>
    %23 = vector.broadcast %cst_8 : f32 to vector<2x128xf32>
    %24 = arith.select %18, %22, %23 : vector<2x128xi1>, vector<2x128xf32>
    %c0_9 = arith.constant 0 : index
    %c0_10 = arith.constant 0 : index
    %c0_11 = arith.constant 0 : index
    %25 = vector.load %arg12[%c0_9, %c0_10, %c0_11] : memref<2x2x32xf32, #tpu.memory_space<vmem>>, vector<1x2x32xf32>
    %26 = vector.shape_cast %25 : vector<1x2x32xf32> to vector<2x32xf32>
    %c0_12 = arith.constant 0 : index
    %c0_13 = arith.constant 0 : index
    %c0_14 = arith.constant 0 : index
    %27 = vector.load %arg13[%c0_12, %c0_13, %c0_14] : memref<2x2x32xf32, #tpu.memory_space<vmem>>, vector<1x2x32xf32>
    %28 = vector.shape_cast %27 : vector<1x2x32xf32> to vector<2x32xf32>
    %29 = tpu.concatenate %12, %26 in 1 : vector<2x32xf32>, vector<2x32xf32> -> vector<2x64xf32>
    %30 = arith.truncf %29 : vector<2x64xf32> to vector<2x64xbf16>
    %c0_15 = arith.constant 0 : index
    %c0_16 = arith.constant 0 : index
    %31 = vector.load %arg5[%c0_15, %c0_16] : memref<64x128xbf16, #tpu.memory_space<vmem>>, vector<64x128xbf16>
    %cst_17 = arith.constant dense<0.000000e+00> : vector<2x128xf32>
    %32 = tpu.matmul %30, %31, %cst_17 {dimension_numbers = #tpu.dot_dimension_numbers<[1], [0], [0], [1], [0, 0, 1, 1], [], []>} : vector<2x64xbf16>, vector<64x128xbf16>, vector<2x128xf32> -> vector<2x128xf32>
    %c0_18 = arith.constant 0 : index
    %c0_19 = arith.constant 0 : index
    %33 = vector.load %arg7[%c0_18, %c0_19] : memref<1x128xf32, #tpu.memory_space<vmem>>, vector<1x128xf32>
    %34 = vector.broadcast %33 : vector<1x128xf32> to vector<2x128xf32>
    %35 = arith.addf %32, %34 : vector<2x128xf32>
    %36 = arith.mulf %35, %21 : vector<2x128xf32>
    %37 = math.tanh %36 : vector<2x128xf32>
    %38 = arith.mulf %37, %21 : vector<2x128xf32>
    %39 = arith.addf %38, %24 : vector<2x128xf32>
    %40 = vector.extract_strided_slice %39 {offsets = [0, 0], sizes = [2, 32], strides = [1, 1]} : vector<2x128xf32> to vector<2x32xf32>
    %41 = vector.extract_strided_slice %39 {offsets = [0, 32], sizes = [2, 32], strides = [1, 1]} : vector<2x128xf32> to vector<2x32xf32>
    %42 = vector.extract_strided_slice %39 {offsets = [0, 64], sizes = [2, 32], strides = [1, 1]} : vector<2x128xf32> to vector<2x32xf32>
    %43 = vector.extract_strided_slice %39 {offsets = [0, 96], sizes = [2, 32], strides = [1, 1]} : vector<2x128xf32> to vector<2x32xf32>
    %44 = arith.mulf %41, %28 : vector<2x32xf32>
    %45 = arith.mulf %40, %42 : vector<2x32xf32>
    %46 = arith.addf %44, %45 : vector<2x32xf32>
    %47 = math.tanh %46 : vector<2x32xf32>
    %48 = arith.mulf %43, %47 : vector<2x32xf32>
    %c0_20 = arith.constant 0 : index
    %c0_21 = arith.constant 0 : index
    %c0_22 = arith.constant 0 : index
    %49 = vector.load %arg12[%c0_20, %c0_21, %c0_22] : memref<2x2x32xf32, #tpu.memory_space<vmem>>, vector<1x2x32xf32>
    %50 = vector.shape_cast %49 : vector<1x2x32xf32> to vector<2x32xf32>
    %51 = vector.shape_cast %48 : vector<2x32xf32> to vector<1x2x32xf32>
    tpu.vector_store %arg12[%c0_20, %c0_21, %c0_22], %51 {strides = array<i32>} : memref<2x2x32xf32, #tpu.memory_space<vmem>>, vector<1x2x32xf32>,
    %c0_23 = arith.constant 0 : index
    %c0_24 = arith.constant 0 : index
    %c0_25 = arith.constant 0 : index
    %52 = vector.load %arg13[%c0_23, %c0_24, %c0_25] : memref<2x2x32xf32, #tpu.memory_space<vmem>>, vector<1x2x32xf32>
    %53 = vector.shape_cast %52 : vector<1x2x32xf32> to vector<2x32xf32>
    %54 = vector.shape_cast %46 : vector<2x32xf32> to vector<1x2x32xf32>
    tpu.vector_store %arg13[%c0_23, %c0_24, %c0_25], %54 {strides = array<i32>} : memref<2x2x32xf32, #tpu.memory_space<vmem>>, vector<1x2x32xf32>,
    %c1 = arith.constant 1 : index
    %c0_26 = arith.constant 0 : index
    %c0_27 = arith.constant 0 : index
    %55 = vector.load %arg12[%c1, %c0_26, %c0_27] : memref<2x2x32xf32, #tpu.memory_space<vmem>>, vector<1x2x32xf32>
    %56 = vector.shape_cast %55 : vector<1x2x32xf32> to vector<2x32xf32>
    %c1_28 = arith.constant 1 : index
    %c0_29 = arith.constant 0 : index
    %c0_30 = arith.constant 0 : index
    %57 = vector.load %arg13[%c1_28, %c0_29, %c0_30] : memref<2x2x32xf32, #tpu.memory_space<vmem>>, vector<1x2x32xf32>
    %58 = vector.shape_cast %57 : vector<1x2x32xf32> to vector<2x32xf32>
    %59 = tpu.concatenate %48, %56 in 1 : vector<2x32xf32>, vector<2x32xf32> -> vector<2x64xf32>
    %60 = arith.truncf %59 : vector<2x64xf32> to vector<2x64xbf16>
    %c0_31 = arith.constant 0 : index
    %c0_32 = arith.constant 0 : index
    %61 = vector.load %arg6[%c0_31, %c0_32] : memref<64x128xbf16, #tpu.memory_space<vmem>>, vector<64x128xbf16>
    %cst_33 = arith.constant dense<0.000000e+00> : vector<2x128xf32>
    %62 = tpu.matmul %60, %61, %cst_33 {dimension_numbers = #tpu.dot_dimension_numbers<[1], [0], [0], [1], [0, 0, 1, 1], [], []>} : vector<2x64xbf16>, vector<64x128xbf16>, vector<2x128xf32> -> vector<2x128xf32>
    %c0_34 = arith.constant 0 : index
    %c0_35 = arith.constant 0 : index
    %63 = vector.load %arg8[%c0_34, %c0_35] : memref<1x128xf32, #tpu.memory_space<vmem>>, vector<1x128xf32>
    %64 = vector.broadcast %63 : vector<1x128xf32> to vector<2x128xf32>
    %65 = arith.addf %62, %64 : vector<2x128xf32>
    %66 = arith.mulf %65, %21 : vector<2x128xf32>
    %67 = math.tanh %66 : vector<2x128xf32>
    %68 = arith.mulf %67, %21 : vector<2x128xf32>
    %69 = arith.addf %68, %24 : vector<2x128xf32>
    %70 = vector.extract_strided_slice %69 {offsets = [0, 0], sizes = [2, 32], strides = [1, 1]} : vector<2x128xf32> to vector<2x32xf32>
    %71 = vector.extract_strided_slice %69 {offsets = [0, 32], sizes = [2, 32], strides = [1, 1]} : vector<2x128xf32> to vector<2x32xf32>
    %72 = vector.extract_strided_slice %69 {offsets = [0, 64], sizes = [2, 32], strides = [1, 1]} : vector<2x128xf32> to vector<2x32xf32>
    %73 = vector.extract_strided_slice %69 {offsets = [0, 96], sizes = [2, 32], strides = [1, 1]} : vector<2x128xf32> to vector<2x32xf32>
    %74 = arith.mulf %71, %58 : vector<2x32xf32>
    %75 = arith.mulf %70, %72 : vector<2x32xf32>
    %76 = arith.addf %74, %75 : vector<2x32xf32>
    %77 = math.tanh %76 : vector<2x32xf32>
    %78 = arith.mulf %73, %77 : vector<2x32xf32>
    %c1_36 = arith.constant 1 : index
    %c0_37 = arith.constant 0 : index
    %c0_38 = arith.constant 0 : index
    %79 = vector.load %arg12[%c1_36, %c0_37, %c0_38] : memref<2x2x32xf32, #tpu.memory_space<vmem>>, vector<1x2x32xf32>
    %80 = vector.shape_cast %79 : vector<1x2x32xf32> to vector<2x32xf32>
    %81 = vector.shape_cast %78 : vector<2x32xf32> to vector<1x2x32xf32>
    tpu.vector_store %arg12[%c1_36, %c0_37, %c0_38], %81 {strides = array<i32>} : memref<2x2x32xf32, #tpu.memory_space<vmem>>, vector<1x2x32xf32>,
    %c1_39 = arith.constant 1 : index
    %c0_40 = arith.constant 0 : index
    %c0_41 = arith.constant 0 : index
    %82 = vector.load %arg13[%c1_39, %c0_40, %c0_41] : memref<2x2x32xf32, #tpu.memory_space<vmem>>, vector<1x2x32xf32>
    %83 = vector.shape_cast %82 : vector<1x2x32xf32> to vector<2x32xf32>
    %84 = vector.shape_cast %76 : vector<2x32xf32> to vector<1x2x32xf32>
    tpu.vector_store %arg13[%c1_39, %c0_40, %c0_41], %84 {strides = array<i32>} : memref<2x2x32xf32, #tpu.memory_space<vmem>>, vector<1x2x32xf32>,
    %85 = arith.truncf %78 : vector<2x32xf32> to vector<2x32xbf16>
    %c0_42 = arith.constant 0 : index
    %c0_43 = arith.constant 0 : index
    %86 = vector.load %arg9[%c0_42, %c0_43] : memref<32x128xbf16, #tpu.memory_space<vmem>>, vector<32x128xbf16>
    %cst_44 = arith.constant dense<0.000000e+00> : vector<2x128xf32>
    %87 = tpu.matmul %85, %86, %cst_44 {dimension_numbers = #tpu.dot_dimension_numbers<[1], [0], [0], [1], [0, 0, 1, 1], [], []>} : vector<2x32xbf16>, vector<32x128xbf16>, vector<2x128xf32> -> vector<2x128xf32>
    %c0_45 = arith.constant 0 : index
    %c0_46 = arith.constant 0 : index
    %88 = vector.load %arg10[%c0_45, %c0_46] : memref<1x128xf32, #tpu.memory_space<vmem>>, vector<1x128xf32>
    %89 = vector.broadcast %88 : vector<1x128xf32> to vector<2x128xf32>
    %90 = arith.addf %87, %89 : vector<2x128xf32>
    %c0_47 = arith.constant 0 : index
    %c0_48 = arith.constant 0 : index
    %c0_49 = arith.constant 0 : index
    %91 = vector.load %arg11[%c0_47, %c0_48, %c0_49] : memref<1x2x128xf32, #tpu.memory_space<vmem>>, vector<1x2x128xf32>
    %92 = vector.shape_cast %91 : vector<1x2x128xf32> to vector<2x128xf32>
    %93 = vector.shape_cast %90 : vector<2x128xf32> to vector<1x2x128xf32>
    tpu.vector_store %arg11[%c0_47, %c0_48, %c0_49], %93 {strides = array<i32>} : memref<1x2x128xf32, #tpu.memory_space<vmem>>, vector<1x2x128xf32>,
    return
  }
  func.func @transform_0(%arg0: i32) -> (i32, i32, i32) {
    %c0_i32 = arith.constant 0 : i32
    %c0_i32_0 = arith.constant 0 : i32
    %c0_i32_1 = arith.constant 0 : i32
    return %arg0, %c0_i32, %c0_i32_0 : i32, i32, i32
  }
  func.func @transform_1(%arg0: i32) -> (i32, i32, i32) {
    %c0_i32 = arith.constant 0 : i32
    %c0_i32_0 = arith.constant 0 : i32
    %c0_i32_1 = arith.constant 0 : i32
    %c0_i32_2 = arith.constant 0 : i32
    return %c0_i32, %c0_i32_0, %c0_i32_1 : i32, i32, i32
  }
  func.func @transform_2(%arg0: i32) -> (i32, i32, i32) {
    %c0_i32 = arith.constant 0 : i32
    %c0_i32_0 = arith.constant 0 : i32
    %c0_i32_1 = arith.constant 0 : i32
    %c0_i32_2 = arith.constant 0 : i32
    return %c0_i32, %c0_i32_0, %c0_i32_1 : i32, i32, i32
  }
  func.func @transform_3(%arg0: i32) -> (i32, i32) {
    %c0_i32 = arith.constant 0 : i32
    %c0_i32_0 = arith.constant 0 : i32
    %c0_i32_1 = arith.constant 0 : i32
    return %c0_i32, %c0_i32_0 : i32, i32
  }
  func.func @transform_4(%arg0: i32) -> (i32, i32) {
    %c0_i32 = arith.constant 0 : i32
    %c0_i32_0 = arith.constant 0 : i32
    %c0_i32_1 = arith.constant 0 : i32
    return %c0_i32, %c0_i32_0 : i32, i32
  }
  func.func @transform_5(%arg0: i32) -> (i32, i32) {
    %c0_i32 = arith.constant 0 : i32
    %c0_i32_0 = arith.constant 0 : i32
    %c0_i32_1 = arith.constant 0 : i32
    return %c0_i32, %c0_i32_0 : i32, i32
  }
  func.func @transform_6(%arg0: i32) -> (i32, i32) {
    %c0_i32 = arith.constant 0 : i32
    %c0_i32_0 = arith.constant 0 : i32
    %c0_i32_1 = arith.constant 0 : i32
    return %c0_i32, %c0_i32_0 : i32, i32
  }
  func.func @transform_7(%arg0: i32) -> (i32, i32) {
    %c0_i32 = arith.constant 0 : i32
    %c0_i32_0 = arith.constant 0 : i32
    %c0_i32_1 = arith.constant 0 : i32
    return %c0_i32, %c0_i32_0 : i32, i32
  }
  func.func @transform_8(%arg0: i32) -> (i32, i32) {
    %c0_i32 = arith.constant 0 : i32
    %c0_i32_0 = arith.constant 0 : i32
    %c0_i32_1 = arith.constant 0 : i32
    return %c0_i32, %c0_i32_0 : i32, i32
  }
  func.func @transform_9(%arg0: i32) -> (i32, i32) {
    %c0_i32 = arith.constant 0 : i32
    %c0_i32_0 = arith.constant 0 : i32
    %c0_i32_1 = arith.constant 0 : i32
    return %c0_i32, %c0_i32_0 : i32, i32
  }
  func.func @transform_10(%arg0: i32) -> (i32, i32, i32) {
    %c0_i32 = arith.constant 0 : i32
    %c0_i32_0 = arith.constant 0 : i32
    %c0_i32_1 = arith.constant 0 : i32
    return %arg0, %c0_i32, %c0_i32_0 : i32, i32, i32
  }
  func.func @transform_11(%arg0: i32) -> (i32, i32, i32) {
    %c0_i32 = arith.constant 0 : i32
    %c0_i32_0 = arith.constant 0 : i32
    %c0_i32_1 = arith.constant 0 : i32
    %c0_i32_2 = arith.constant 0 : i32
    return %c0_i32, %c0_i32_0, %c0_i32_1 : i32, i32, i32
  }
  func.func @transform_12(%arg0: i32) -> (i32, i32, i32) {
    %c0_i32 = arith.constant 0 : i32
    %c0_i32_0 = arith.constant 0 : i32
    %c0_i32_1 = arith.constant 0 : i32
    %c0_i32_2 = arith.constant 0 : i32
    return %c0_i32, %c0_i32_0, %c0_i32_1 : i32, i32, i32
  }
}

</mosaic_0001>

<bundles_post_ra>
// kernel: tpu_custom_call.1
= control target key start
LH: loop header
LB: loop body
LE: loop exit
PB: predicated region body
PF: predicated region fallthrough
CT: control target
= control target key end

     0   :  { %18 = vsyncpa [#allocation3], 0  ;;  %s1143_s0 = inlined_call_operand.vmem [shape: s32[1,2,1], index: 0, kind: input, shape index: {}]   ;;  %s1144_s1 = inlined_call_operand.hbm [shape: f32[2,2,32], index: 1, kind: input, shape index: {}, may-alias: {1,11}]   ;;  %s1145_s2 = inlined_call_operand.hbm [shape: f32[2,2,32], index: 2, kind: input, shape index: {}, may-alias: {2,12}]   ;;  %s1146_s3 = inlined_call_operand.vmem [shape: bf16[64,32], index: 3, kind: input, shape index: {}]   ;;  %s1147_s4 = inlined_call_operand.vmem [shape: bf16[64,128], index: 4, kind: input, shape index: {}]   ;;  %s1148_s5 = inlined_call_operand.vmem [shape: bf16[64,128], index: 5, kind: input, shape index: {}]   ;;  %s1149_s6 = inlined_call_operand.vmem [shape: f32[1,128], index: 6, kind: input, shape index: {}]   ;;  %s1150_s7 = inlined_call_operand.vmem [shape: f32[1,128], index: 7, kind: input, shape index: {}]   ;;  %s1151_s8 = inlined_call_operand.hbm [shape: bf16[32,128], index: 8, kind: input, shape index: {}]   ;;  %s1152_s9 = inlined_call_operand.hbm [shape: f32[1,128], index: 9, kind: input, shape index: {}]   ;;  %s1153_s10 = inlined_call_operand.hbm [shape: f32[1,2,128], index: 10, kind: output, shape index: {0}]   ;;  %s1154_s11 = inlined_call_operand.hbm [shape: f32[2,2,32], index: 11, kind: output, shape index: {1}, may-alias: {1,11}]   ;;  %s1155_s12 = inlined_call_operand.hbm [shape: f32[2,2,32], index: 12, kind: output, shape index: {2}, may-alias: {2,12}]  }
   0x1   :  { %19 = vsyncpa [#allocation6], 0 }
   0x2   :  { %20 = vsyncpa [#allocation9], 0 }
   0x3   :  { %21 = vsyncpa [#allocation4], 0 }
   0x4   :  { %22 = vsyncpa [#allocation12], 0  ;;  %s858_s21 = smov [#allocation5]   ;;  %s859_s23 = smov [#allocation2]  }
   0x5   :  { %s42_s22 = sshll.u32 %s858_s21, 4  ;;  %s30_s24 = sshll.u32 %s859_s23, 4  ;;  %s43_s22 = int_to_ptr.vmem [resolvable:$true] %s42_s22  ;;  %s939_s24 = int_to_ptr.vmem [resolvable:$true] %s30_s24 }
   0x6   :  { %s694_s27 = scalar_lea.hbm %s1145_s2, 64 }
   0x7   :  { %p695_p0 = scmp.ne.s32.totalorder %s1145_s2, %s694_s27  ;;  %p698_p1 = scmp.lt.u32.totalorder %s694_s27, %s1145_s2 }
   0x9   :  { %p700_p2 = pnand %p698_p1, %p695_p0 }
   0xb   :  { %703 = shalt.err (!%p700_p2)
}
   0xc   :  { %s704_s14 = scalar_lea.vmem %s43_s22, 64  ;;  %p709_p4 = scmp.lt.s32.totalorder %s43_s22, %s43_s22 }
   0xd   :  { %p705_p3 = scmp.ne.s32.totalorder %s43_s22, %s704_s14  ;;  %p710_p5 = scmp.lt.s32.totalorder %s704_s14, %s704_s14 }
   0xf   :  { %p711_p6 = por %p710_p5, %p709_p4 }
  0x11   :  { %p712_p7 = pnand %p711_p6, %p705_p3 }
  0x13   :  { %715 = shalt.err (!%p712_p7)
}
  0x14   :  { %s860_s15 = smov 32   ;;  %s861_s16 = smov 2  }
  0x15   :  { %48 = dma.hbm_to_vmem [thread:$0]  %s1145_s2, 64, %s43_s22, [#allocation6], %s860_s15, %s860_s15, %s861_s16  }
  0x16   :  { %s716_s21 = scalar_lea.hbm %s1144_s1, 64 }
  0x17   :  { %p717_p8 = scmp.ne.s32.totalorder %s1144_s1, %s716_s21  ;;  %p720_p9 = scmp.lt.u32.totalorder %s716_s21, %s1144_s1 }
  0x19   :  { %p722_p10 = pnand %p720_p9, %p717_p8 }
  0x1b   :  { %725 = shalt.err (!%p722_p10)
}
  0x1c   :  { %s726_s28 = scalar_lea.vmem %s939_s24, 64  ;;  %p731_p12 = scmp.lt.s32.totalorder %s939_s24, %s939_s24 }
  0x1d   :  { %p727_p11 = scmp.ne.s32.totalorder %s939_s24, %s726_s28  ;;  %p732_p13 = scmp.lt.s32.totalorder %s726_s28, %s726_s28 }
  0x1f   :  { %p733_p0 = por %p732_p13, %p731_p12 }
  0x21   :  { %p734_p1 = pnand %p733_p0, %p727_p11 }
  0x23   :  { %737 = shalt.err (!%p734_p1)
}
  0x24   :  { %36 = dma.hbm_to_vmem [thread:$0]  %s1144_s1, 64, %s939_s24, [#allocation3], %s860_s15, %s860_s15, %s861_s16  }
  0x25   :  { %s862_s29 = smov [#allocation7]   ;;  %s738_s17 = scalar_lea.hbm %s1151_s8, 256 }
  0x26   :  { %s64_s30 = sshll.u32 %s862_s29, 4  ;;  %p739_p2 = scmp.ne.s32.totalorder %s1151_s8, %s738_s17  ;;  %s65_s30 = int_to_ptr.vmem [resolvable:$true] %s64_s30 }
  0x27   :  { %p742_p3 = scmp.lt.u32.totalorder %s738_s17, %s1151_s8 }
  0x29   :  { %p744_p4 = pnand %p742_p3, %p739_p2 }
  0x2b   :  { %747 = shalt.err (!%p744_p4)
}
  0x2c   :  { %s748_s23 = scalar_lea.vmem %s65_s30, 256  ;;  %p753_p6 = scmp.lt.s32.totalorder %s65_s30, %s65_s30 }
  0x2d   :  { %p749_p5 = scmp.ne.s32.totalorder %s65_s30, %s748_s23  ;;  %p754_p7 = scmp.lt.s32.totalorder %s748_s23, %s748_s23 }
  0x2f   :  { %p755_p8 = por %p754_p7, %p753_p6 }
  0x31   :  { %p756_p9 = pnand %p755_p8, %p749_p5 }
  0x33   :  { %759 = shalt.err (!%p756_p9)
}
  0x34   :  { %s863_s1 = smov 64   ;;  %s864_s24 = smov 4  }
  0x35   :  { %70 = dma.hbm_to_vmem [thread:$0]  %s1151_s8, 256, %s65_s30, [#allocation6], %s863_s1, %s863_s1, %s864_s24  }
  0x36   :  { %s865_s27 = smov [#allocation8]   ;;  %s760_s29 = scalar_lea.hbm %s1152_s9, 16 }
  0x37   :  { %s77_s28 = sshll.u32 %s865_s27, 4  ;;  %p761_p10 = scmp.ne.s32.totalorder %s1152_s9, %s760_s29  ;;  %s78_s28 = int_to_ptr.vmem [resolvable:$true] %s77_s28 }
  0x38   :  { %p764_p11 = scmp.lt.u32.totalorder %s760_s29, %s1152_s9 }
  0x3a   :  { %p766_p12 = pnand %p764_p11, %p761_p10 }
  0x3c   :  { %769 = shalt.err (!%p766_p12)
}
  0x3d   :  { %s770_s19 = scalar_lea.vmem %s78_s28, 16  ;;  %s774_s8 = scalar_lea.vmem %s78_s28, 32 }
  0x3e   :  { %p771_p13 = scmp.ne.s32.totalorder %s78_s28, %s770_s19  ;;  %p775_p0 = scmp.lt.s32.totalorder %s78_s28, %s78_s28 }
  0x3f   :  { %p776_p1 = scmp.lt.s32.totalorder %s774_s8, %s770_s19 }
  0x41   :  { %p777_p2 = por %p776_p1, %p775_p0 }
  0x43   :  { %p778_p3 = pnand %p777_p2, %p771_p13 }
  0x45   :  { %781 = shalt.err (!%p778_p3)
}
  0x46   :  { %80 = dma.hbm_to_vmem [thread:$0]  %s1152_s9, 16, %s78_s28, [#allocation9]  }
  0x47   :  { %848 = dma.done.wait [#allocation3], 64  }
  0x48   :  { %849 = vsyncadd [#allocation3], 4294967232 }
  0x49   :  { %850 = dma.done.wait [#allocation6], 320  }
  0x4a   :  { %851 = vsyncadd [#allocation6], 4294966976 }
  0x4b   :  { %852 = dma.done.wait [#allocation9], 16  }
  0x4c   :  { %853 = vsyncadd [#allocation9], 4294967280  ;;  %v866_v0 = vmov 0   ;;  %v867_v1 = vmov 0.0   ;;  %v107_v2 = vld [vmem:[%s1143_s0] sm:$0x3]  ;;  %v108_v12 = vlaneseq }
  0x4d   :  { %671 = vset.pattern.permute.xlu0 %v866_v0  ;;  %611 = vmatprep.subr.bf16.mxu0 %v867_v1  ;;  %v672_v3 = vld [vmem:[%s1146_s3] sm:$0xff]   ;;  %v673_v4 = vld [vmem:[%s1146_s3 + $0x8] sm:$0xff]   ;;  %vm868_vm0 = vmmov 0   ;;  %vm100_vm1 = vcmask 254976   ;;  %v674_v7 = vld [vmem:[%s1146_s3 + $0x10] sm:$0xff]   ;;  %vm149_vm3 = vcmask 523264  }
  0x4e   :  { %623 = vmatprep.subr.bf16.mxu1 %v867_v1  ;;  %111 = vperm.xlu0 %671, %v107_v2   ;;  %v98_v5 = vld [vmem:[#allocation2] sm:$0x3]  ;;  %v677_v8 = vld [vmem:[%s1147_s4 + $0x8] sm:$0xff]   ;;  %v675_v9 = vld [vmem:[%s1146_s3 + $0x18] sm:$0xff]   ;;  %v109_v13 = vand.u32 127, %v108_v12  ;;  %vm204_vm4 = vcmask 261120  }
  0x4f   :  { %612 = vmatpush3.bf16.msra.mxu0 %v672_v3  ;;  %619 = vmatprep.mubr.msk.bf16.mxu0 %vm868_vm0, %v867_v1  ;;  %v676_v6 = vld [vmem:[%s1147_s4] sm:$0xff]   ;;  %101 = vst.msk [vmem:[#allocation11] sm:$0x3] %vm100_vm1, %v98_v5  ;;  %v678_v10 = vld [vmem:[%s1147_s4 + $0x10] sm:$0xff]   ;;  %v679_v17 = vld [vmem:[%s1147_s4 + $0x18] sm:$0xff]   ;;  %v869_v27 = vmov 0.5  }
  0x50   :  { %613 = vmatprep.subr.bf16.mxu0 %v867_v1  ;;  %631 = vmatprep.mubr.msk.bf16.mxu1 %vm868_vm0, %v867_v1  ;;  %v103_v25 = vld [vmem:[#allocation5] sm:$0x3]  ;;  %vm193_vm5 = vcmp.ge.s32.totalorder %v109_v13, 64  ;;  %vm194_vm6 = vcmp.lt.s32.totalorder %v109_v13, 96  ;;  %v577_v26 = vld [vmem:[%s1149_s6] ss:$0 sm:$0xff] }
  0x51   :  { %624 = vmatpush3.bf16.msra.mxu1 %v676_v6  ;;  %105 = vst.msk [vmem:[#allocation13] sm:$0x3] %vm100_vm1, %v103_v25  ;;  %vm195_vm7 = vmand %vm193_vm5, %vm194_vm6  ;;  %v99_v42 = vld [vmem:[#allocation2 + $0x2] sm:$0x3]  ;;  %v681_v48 = vld [vmem:[%s1148_s5 + $0x8] sm:$0xff]  }
  0x52   :  { %625 = vmatprep.subr.bf16.mxu1 %v867_v1  ;;  %v196_v28 = vsel %vm195_vm7, 1.0, %v869_v27  ;;  %v197_v36 = vsel %vm195_vm7, 0.0, %v869_v27  ;;  %102 = vst.msk [vmem:[#allocation11 + $0x2] sm:$0x3] %vm100_vm1, %v99_v42  ;;  %v680_v47 = vld [vmem:[%s1148_s5] sm:$0xff]   ;;  %v682_v49 = vld [vmem:[%s1148_s5 + $0x10] sm:$0xff]  }
  0x53   :  { %614 = vmatpush3.bf16.msra.mxu0 %v673_v4  ;;  %v683_v52 = vld [vmem:[%s1148_s5 + $0x18] sm:$0xff]   ;;  %v104_v53 = vld [vmem:[#allocation5 + $0x2] sm:$0x3]  ;;  %v583_v61 = vld [vmem:[%s1150_s7] ss:$0 sm:$0xff]  ;;  %s870_s7 = smov 96  }
  0x54   :  { %615 = vmatprep.subr.bf16.mxu0 %v867_v1  ;;  %106 = vst.msk [vmem:[#allocation13 + $0x2] sm:$0x3] %vm100_vm1, %v104_v53 }
  0x55   :  { %626 = vmatpush3.bf16.msra.mxu1 %v677_v8 }
  0x56   :  { %627 = vmatprep.subr.bf16.mxu1 %v867_v1  ;;  %v198_v11 = vld [vmem:[#allocation11] sm:$0x3] }
  0x57   :  { %616 = vmatpush3.bf16.msra.mxu0 %v674_v7  ;;  %201 = vrot.lane.b32.xlu0 %v198_v11, %s860_s15 }
  0x58   :  { %617 = vmatprep.subr.bf16.mxu0 %v867_v1  ;;  %v199_v39 = vld [vmem:[#allocation13] sm:$0x3] }
  0x59   :  { %628 = vmatpush3.bf16.msra.mxu1 %v678_v10  ;;  %v326_v51 = vld [vmem:[#allocation11 + $0x2] sm:$0x3] }
  0x5a   :  { %629 = vmatprep.subr.bf16.mxu1 %v867_v1 }
  0x5b   :  { %618 = vmatpush3.bf16.msra.mxu0 %v675_v9  ;;  %v328_v56 = vld [vmem:[#allocation13 + $0x2] sm:$0x3] }
  0x5c   :  { %635 = vmatprep.subr.bf16.mxu0 %v867_v1 }
  0x5d   :  { %630 = vmatpush3.bf16.msra.mxu1 %v679_v17 }
  0x5e   :  { %647 = vmatprep.subr.bf16.mxu1 %v867_v1 }
  0xcd   :  { %v112_v14 = vpop.permute.xlu0 %111 }
  0xce   :  { %vm113_vm2 = vcmp.eq.s32.totalorder %v109_v13, %v112_v14  ;;  %v684_v14 = vld [vmem:[#allocation7] sm:$0xff]  }
  0xcf   :  { %v571_v15 = vsel %vm113_vm2, 1.0, %v867_v1 }
  0xd0   :  { %v116_v16 = vpack.c.bf16 %v571_v15, %v571_v15  ;;  %v685_v15 = vld [vmem:[#allocation7 + $0x8] sm:$0xff]  }
  0xd1   :  { %v202_v18 = vpop.permute.xlu0 %201 }
  0xd2   :  { %620 = vmatmul.mubr.msk.bf16.vlgmr.msra.gmra.mrb[0].mxu0 %vm149_vm3, %v116_v16 }
  0xd3   :  { %643 = vmatprep.mubr.msk.bf16.mxu0 %vm868_vm0, %v867_v1  ;;  %636 = vmatpush3.bf16.msra.mxu0 %v680_v47 }
  0xd4   :  { %637 = vmatprep.subr.bf16.mxu0 %v867_v1 }
  0xd7   :  { %638 = vmatpush3.bf16.msra.mxu0 %v681_v48 }
  0xd8   :  { %639 = vmatprep.subr.bf16.mxu0 %v867_v1 }
  0xdb   :  { %640 = vmatpush3.bf16.msra.mxu0 %v682_v49 }
  0xdc   :  { %641 = vmatprep.subr.bf16.mxu0 %v867_v1 }
  0xdf   :  { %642 = vmatpush3.bf16.msra.mxu0 %v683_v52 }
 0x1a5   :  { %v187_v19 = vpop.f32.mrb[0].mxu0 }
 0x1a6   :  { %v205_v20 = vsel %vm204_vm4, %v187_v19, %v202_v18  ;;  %v621_v21 = vpop.f32.mrb[1].mxu0 }
 0x1a7   :  { %v206_v22 = vpack.c.bf16 %v205_v20, %v205_v20  ;;  %v190_v23 = vpop.f32.mrb[2].mxu0 }
 0x1a8   :  { %v622_v24 = vpop.f32.mrb[3].mxu0 }
 0x1a9   :  { %632 = vmatmul.mubr.msk.bf16.vlgmr.msra.gmra.mrb[0].mxu1 %vm149_vm3, %v206_v22 }
 0x1aa   :  { %651 = vmatprep.mubr.msk.bf16.mxu1 %vm868_vm0, %v867_v1  ;;  %648 = vmatpush3.bf16.msra.mxu1 %v684_v14 }
 0x1ab   :  { %649 = vmatprep.subr.bf16.mxu1 %v867_v1 }
 0x1ae   :  { %650 = vmatpush3.bf16.msra.mxu1 %v685_v15 }
 0x27c   :  { %v283_v29 = vpop.f32.mrb[0].mxu1 }
 0x27d   :  { %v284_v30 = vadd.f32 %v577_v26, %v283_v29  ;;  %v633_v31 = vpop.f32.mrb[1].mxu1 }
 0x27e   :  { %v286_v32 = vpop.f32.mrb[2].mxu1 }
 0x27f   :  { %v289_v33 = vmul.f32 %v284_v30, %v196_v28  ;;  %v634_v34 = vpop.f32.mrb[3].mxu1 }
 0x281   :  { %686 = vtanh.f32 %v289_v33 }
 0x28b   :  { %v687_v35 = vpop.eup %686 }
 0x28c   :  { %v291_v37 = vmul.f32 %v687_v35, %v196_v28 }
 0x28e   :  { %v292_v38 = vadd.f32 %v291_v37, %v197_v36 }
 0x290   :  { %299 = vrot.lane.b32.xlu1 %v292_v38, %s863_s1 }
 0x294   :  { %294 = vrot.lane.b32.xlu1 %v199_v39, %s860_s15 }
 0x302   :  { %v300_v40 = vpop.permute.xlu1 %299 }
 0x303   :  { %v302_v41 = vmul.f32 %v300_v40, %v292_v38 }
 0x305   :  { %304 = vrot.lane.b32.xlu0 %v302_v41, %s860_s15 }
 0x306   :  { %v295_v43 = vpop.permute.xlu1 %294 }
 0x307   :  { %v297_v44 = vmul.f32 %v295_v43, %v292_v38 }
 0x377   :  { %v305_v45 = vpop.permute.xlu0 %304 }
 0x378   :  { %v1061_v46 = vadd.f32 %v305_v45, %v297_v44 }
 0x37a   :  { %688 = vtanh.f32 %v1061_v46 }
 0x384   :  { %v689_v50 = vpop.eup %688 }
 0x385   :  { %310 = vrot.lane.b32.xlu1 %v689_v50, %s863_s1 }
 0x389   :  { %330 = vrot.lane.b32.xlu1 %v326_v51, %s860_s15 }
 0x38d   :  { %422 = vrot.lane.b32.xlu1 %v328_v56, %s860_s15 }
 0x3f7   :  { %v311_v54 = vpop.permute.xlu1 %310 }
 0x3f8   :  { %v313_v55 = vmul.f32 %v311_v54, %v292_v38 }
 0x3fa   :  { %315 = vrot.lane.b32.xlu0 %v313_v55, %s860_s15 }
 0x3fb   :  { %v331_v57 = vpop.permute.xlu1 %330 }
 0x3ff   :  { %v423_v10 = vpop.permute.xlu1 %422 }
 0x46c   :  { %v316_v58 = vpop.permute.xlu0 %315 }
 0x46d   :  { %319 = vst.msk [vmem:[#allocation11] sm:$0x3] %vm100_vm1, %v316_v58  ;;  %v333_v59 = vsel %vm204_vm4, %v316_v58, %v331_v57 }
 0x46e   :  { %v334_v60 = vpack.c.bf16 %v333_v59, %v333_v59 }
 0x470   :  { %644 = vmatmul.mubr.msk.bf16.vlgmr.msra.gmra.mrb[4].mxu0 %vm149_vm3, %v334_v60 }
 0x543   :  { %v411_v62 = vpop.f32.mrb[4].mxu0 }
 0x544   :  { %v412_v63 = vadd.f32 %v583_v61, %v411_v62  ;;  %v645_v0 = vpop.f32.mrb[5].mxu0 }
 0x545   :  { %v414_v2 = vpop.f32.mrb[6].mxu0 }
 0x546   :  { %v417_v3 = vmul.f32 %v412_v63, %v196_v28  ;;  %v646_v4 = vpop.f32.mrb[7].mxu0 }
 0x548   :  { %690 = vtanh.f32 %v417_v3 }
 0x552   :  { %v691_v5 = vpop.eup %690 }
 0x553   :  { %v419_v6 = vmul.f32 %v691_v5, %v196_v28 }
 0x555   :  { %v420_v7 = vadd.f32 %v419_v6, %v197_v36 }
 0x557   :  { %427 = vrot.lane.b32.xlu0 %v420_v7, %s863_s1  ;;  %v425_v11 = vmul.f32 %v423_v10, %v420_v7 }
 0x5c9   :  { %v428_v8 = vpop.permute.xlu0 %427 }
 0x5ca   :  { %v430_v9 = vmul.f32 %v428_v8, %v420_v7 }
 0x5cc   :  { %432 = vrot.lane.b32.xlu0 %v430_v9, %s860_s15 }
 0x63e   :  { %v433_v12 = vpop.permute.xlu0 %432 }
 0x63f   :  { %v435_v13 = vadd.f32 %v433_v12, %v425_v11 }
 0x641   :  { %692 = vtanh.f32 %v435_v13 }
 0x64b   :  { %v693_v16 = vpop.eup %692 }
 0x64c   :  { %438 = vrot.lane.b32.xlu1 %v693_v16, %s863_s1  ;;  %s871_s1 = smov [#allocation11]  }
 0x64d   :  { %s538_s27 = sshll.u32 %s871_s1, 4  ;;  %s539_s27 = int_to_ptr.vmem [resolvable:$true] %s538_s27 }
 0x64e   :  { %s782_s0 = scalar_lea.vmem %s539_s27, 64  ;;  %p787_p5 = scmp.lt.s32.totalorder %s539_s27, %s539_s27 }
 0x64f   :  { %p783_p4 = scmp.ne.s32.totalorder %s539_s27, %s782_s0  ;;  %p788_p6 = scmp.lt.s32.totalorder %s782_s0, %s782_s0 }
 0x651   :  { %p789_p7 = por %p788_p6, %p787_p5 }
 0x653   :  { %p790_p8 = pnand %p789_p7, %p783_p4 }
 0x6be   :  { %v439_v17 = vpop.permute.xlu1 %438 }
 0x6bf   :  { %v441_v18 = vmul.f32 %v439_v17, %v420_v7 }
 0x6c1   :  { %443 = vrot.lane.b32.xlu1 %v441_v18, %s860_s15  ;;  %v452_v19 = vpack.c.bf16 %v441_v18, %v441_v18 }
 0x6c3   :  { %465 = vrot.lane.b32.xlu0 %v452_v19, %s860_s15 }
 0x6c5   :  { %448 = vrot.lane.b32.xlu1 %v435_v13, %s870_s7 }
 0x6c7   :  { %321 = vrot.lane.b32.xlu0 %v1061_v46, %s870_s7 }
 0x733   :  { %v444_v20 = vpop.permute.xlu1 %443 }
 0x734   :  { %446 = vst.msk [vmem:[#allocation11 + $0x2] sm:$0x3] %vm100_vm1, %v444_v20 }
 0x735   :  { %v466_v21 = vpop.permute.xlu0 %465 }
 0x736   :  { %652 = vmatmul.mubr.msk.bf16.vlgmr.msra.gmra.mrb[4].mxu1 %vm204_vm4, %v466_v21 }
 0x737   :  { %v449_v1 = vpop.permute.xlu1 %448 }
 0x738   :  { %451 = vst.msk [vmem:[#allocation13 + $0x2] sm:$0x3] %vm100_vm1, %v449_v1 }
 0x739   :  { %v322_v22 = vpop.permute.xlu0 %321 }
 0x73a   :  { %324 = vst.msk [vmem:[#allocation13] sm:$0x3] %vm100_vm1, %v322_v22 }
 0x73b   :  { %793 = shalt.err (!%p790_p8)
}
 0x73c   :  { %s794_s22 = scalar_lea.hbm %s1154_s11, 64 }
 0x73d   :  { %p795_p9 = scmp.ne.s32.totalorder %s1154_s11, %s794_s22  ;;  %p798_p10 = scmp.lt.u32.totalorder %s794_s22, %s1154_s11 }
 0x73f   :  { %p800_p11 = pnand %p798_p10, %p795_p9 }
 0x741   :  { %803 = shalt.err (!%p800_p11)
}
 0x742   :  { %544 = dma.vmem_to_hbm [thread:$0]  %s539_s27, 64, %s1154_s11, [#allocation12], %s860_s15, %s860_s15, %s861_s16  }
 0x743   :  { %s872_s19 = smov [#allocation13]  }
 0x744   :  { %s550_s4 = sshll.u32 %s872_s19, 4  ;;  %s551_s4 = int_to_ptr.vmem [resolvable:$true] %s550_s4 }
 0x745   :  { %s804_s8 = scalar_lea.vmem %s551_s4, 64  ;;  %p809_p13 = scmp.lt.s32.totalorder %s551_s4, %s551_s4 }
 0x746   :  { %p805_p12 = scmp.ne.s32.totalorder %s551_s4, %s804_s8  ;;  %p810_p0 = scmp.lt.s32.totalorder %s804_s8, %s804_s8 }
 0x748   :  { %p811_p1 = por %p810_p0, %p809_p13 }
 0x74a   :  { %p812_p2 = pnand %p811_p1, %p805_p12 }
 0x74c   :  { %815 = shalt.err (!%p812_p2)
}
 0x74d   :  { %s816_s20 = scalar_lea.hbm %s1155_s12, 64 }
 0x74e   :  { %p817_p3 = scmp.ne.s32.totalorder %s1155_s12, %s816_s20  ;;  %p820_p4 = scmp.lt.u32.totalorder %s816_s20, %s1155_s12 }
 0x750   :  { %p822_p5 = pnand %p820_p4, %p817_p3 }
 0x752   :  { %825 = shalt.err (!%p822_p5)
}
 0x753   :  { %556 = dma.vmem_to_hbm [thread:$0]  %s551_s4, 64, %s1155_s12, [#allocation12], %s860_s15, %s860_s15, %s861_s16   ;;  %v589_v23 = vld [vmem:[#allocation8] ss:$0 sm:$0xff] }
 0x754   :  { %s873_s5 = smov [#allocation10]  }
 0x755   :  { %s529_s26 = sshll.u32 %s873_s5, 4  ;;  %s530_s26 = int_to_ptr.vmem [resolvable:$true] %s529_s26 }
 0x756   :  { %s826_s7 = scalar_lea.vmem %s530_s26, 32  ;;  %p831_p7 = scmp.lt.s32.totalorder %s530_s26, %s530_s26 }
 0x757   :  { %p827_p6 = scmp.ne.s32.totalorder %s530_s26, %s826_s7  ;;  %p832_p8 = scmp.lt.s32.totalorder %s826_s7, %s826_s7 }
 0x759   :  { %p833_p9 = por %p832_p8, %p831_p7 }
 0x75b   :  { %p834_p10 = pnand %p833_p9, %p827_p6 }
 0x809   :  { %v516_v24 = vpop.f32.mrb[4].mxu1 }
 0x80a   :  { %v517_v25 = vadd.f32 %v589_v23, %v516_v24  ;;  %v653_v26 = vpop.f32.mrb[5].mxu1 }
 0x80b   :  { %v519_v27 = vpop.f32.mrb[6].mxu1 }
 0x80c   :  { %522 = vst [vmem:[#allocation10] sm:$0x3] %v517_v25  ;;  %v654_v28 = vpop.f32.mrb[7].mxu1 }
 0x80d   :  { %837 = shalt.err (!%p834_p10)
}
 0x80e   :  { %s838_s12 = scalar_lea.hbm %s1153_s10, 32 }
 0x80f   :  { %p839_p11 = scmp.ne.s32.totalorder %s1153_s10, %s838_s12  ;;  %p842_p12 = scmp.lt.u32.totalorder %s838_s12, %s1153_s10 }
 0x811   :  { %p844_p13 = pnand %p842_p12, %p839_p11 }
 0x813   :  { %847 = shalt.err (!%p844_p13)
}
 0x814   :  { %532 = dma.vmem_to_hbm [thread:$0]  %s530_s26, 32, %s1153_s10, [#allocation4]  }
 0x815   :  { %854 = dma.done.wait [#allocation4], 32  }
 0x816   :  { %855 = vsyncadd [#allocation4], 4294967264 }
 0x817   :  { %856 = dma.done.wait [#allocation12], 128  }
 0x818   :  { %857 = vsyncadd [#allocation12], 4294967168 }
 0x819   :  { %566 = vsyncpa [#allocation3], 1 }
 0x81a   :  { %567 = vsyncpa [#allocation6], 1 }
 0x81b   :  { %568 = vsyncpa [#allocation9], 1 }
 0x81c   :  { %569 = vsyncpa [#allocation4], 1 }
 0x81d   :  { %570 = vsyncpa [#allocation12], 1 }

</bundles_post_ra>
